<compile_context>
chip_gen: v7x
topology: tpu7x:2x2x1
jax: 0.10.0
libtpu: 0.0.40
codegen_flags: <defaults>
</compile_context>

<pallas_src>
import jax
import jax.numpy as jnp
from jax.experimental import pallas as pl
from jax.experimental.pallas import tpu as pltpu

IN_FEATURES = 3
OUT_FEATURES = 1

_LANE_TILE = 8 * 128                 # one full f32 vreg worth of batch elements
_SINGLE_BLOCK_MAX_LANES = 256 * 1024  # <= ~4 MiB slab: no grid, whole-array block
_TARGET_TILE_LANES = 256 * 1024       # ~4 MiB HBM / ~8 MiB dbl-buffered VMEM per step


def _round_up(v, m):
    return ((v + m - 1) // m) * m


def _linear_kernel(w_ref, b_ref, x_ref, o_ref):
    """VPU FMA over features on full-sublane vregs.

    w_ref: [IN_FEATURES]          f32 in SMEM
    b_ref: [OUT_FEATURES]         f32 in SMEM
    x_ref: [IN_FEATURES, 8, T]    f32 in VMEM (batch on sublanes x lanes)
    o_ref: [8, T]                 f32 in VMEM
    """
    acc = x_ref[0] * w_ref[0]                      # [8, T] full vregs
    for f in range(1, x_ref.shape[0]):             # unrolled (IN_FEATURES = 3)
        acc = acc + x_ref[f] * w_ref[f]
    o_ref[...] = acc + b_ref[0]


def linear_pallas(x, weight, bias, tile_n=None):
    """y = x @ weight.T + bias.

    x:      [N, IN_FEATURES] f32
    weight: [OUT_FEATURES, IN_FEATURES] f32 (PyTorch Linear layout)
    bias:   [OUT_FEATURES] f32
    returns [N, OUT_FEATURES] f32
    """
    n = x.shape[0]

    # Pad only to vreg granularity (1024 batch elements), never to a full tile.
    n_pad = _round_up(max(n, 1), _LANE_TILE)
    n_cols = n_pad // 8

    if tile_n is None:
        if n_pad <= _SINGLE_BLOCK_MAX_LANES:
            tile_n = n_pad                          # single block, no grid
        else:
            num_tiles = pl.cdiv(n_pad, _TARGET_TILE_LANES)
            if num_tiles % 2:                       # even count -> both v7x TCs busy
                num_tiles += 1
            tile_n = _round_up(pl.cdiv(n_pad, num_tiles), _LANE_TILE)
    tile_n = min(_round_up(max(tile_n, _LANE_TILE), _LANE_TILE), n_pad)
    tile_cols = tile_n // 8
    num_tiles = pl.cdiv(n_cols, tile_cols)          # ragged last block is fine

    # Single fused pad-of-transpose pass, then a free row-major split view.
    x_t = jnp.pad(x.astype(jnp.float32).T, ((0, 0), (0, n_pad - n)))
    x_t = x_t.reshape(IN_FEATURES, 8, n_cols)

    # OUT_FEATURES == 1, so a reshape (not a transpose) recovers the [IN] vector.
    w = weight.astype(jnp.float32).reshape(IN_FEATURES)
    b = bias.astype(jnp.float32).reshape(OUT_FEATURES)

    out_shape = jax.ShapeDtypeStruct((8, n_cols), jnp.float32)
    smem_spec = pl.BlockSpec(memory_space=pltpu.MemorySpace.SMEM)

    if num_tiles == 1:
        # Cheapest dispatch: no grid, whole-array blocks.
        out = pl.pallas_call(
            _linear_kernel,
            out_shape=out_shape,
            in_specs=[
                smem_spec,
                smem_spec,
                pl.BlockSpec(memory_space=pltpu.MemorySpace.VMEM),
            ],
            out_specs=pl.BlockSpec(memory_space=pltpu.MemorySpace.VMEM),
        )(w, b, x_t)
    else:
        # Large batch: 1-D lane-tile grid over the column axis, marked
        # "parallel" so v7x shards it across its 2 TensorCores.
        vmem_bytes = 2 * (IN_FEATURES + OUT_FEATURES) * tile_n * 4  # dbl-buffered
        vmem_limit = min(48 << 20, max(16 << 20, 2 * vmem_bytes))
        out = pl.pallas_call(
            _linear_kernel,
            out_shape=out_shape,
            grid=(num_tiles,),
            in_specs=[
                smem_spec,
                smem_spec,
                pl.BlockSpec((IN_FEATURES, 8, tile_cols), lambda i: (0, 0, i)),
            ],
            out_specs=pl.BlockSpec((8, tile_cols), lambda i: (0, i)),
            compiler_params=pltpu.CompilerParams(
                dimension_semantics=("parallel",),
                vmem_limit_bytes=vmem_limit,
            ),
        )(w, b, x_t)

    # Free row-major view back to the module's [N, 1] API shape.
    return out.reshape(n_pad)[:n].reshape(n, OUT_FEATURES)


@jax.jit
def dummy_model_forward(x, params):
    y = linear_pallas(x, params["weight"], params["bias"])
    return {"y_pred": y, "latent_code": y}


if __name__ == "__main__":
    key = jax.random.PRNGKey(0)
    kx, kw, kb = jax.random.split(key, 3)

    # Inputs consistent with the module: x = torch.randn(10, 3)
    x = jax.random.normal(kx, (10, IN_FEATURES), dtype=jnp.float32)

    # PyTorch Linear layout: weight [out, in], bias [out].
    bound = 1.0 / (IN_FEATURES ** 0.5)
    params = {
        "weight": jax.random.uniform(
            kw, (OUT_FEATURES, IN_FEATURES), jnp.float32, -bound, bound
        ),
        "bias": jax.random.uniform(kb, (OUT_FEATURES,), jnp.float32, -bound, bound),
    }

    out = dummy_model_forward(x, params)
    jax.block_until_ready(out)

    ref = x @ params["weight"].T + params["bias"]
    assert out["y_pred"].shape == (10, 1)
    assert out["latent_code"].shape == (10, 1)
    assert jnp.allclose(out["y_pred"], ref, atol=1e-5)
    assert jnp.allclose(out["latent_code"], ref, atol=1e-5)

    # Also exercise the tiled (gridded) path, including a ragged final block:
    # n=4500 -> n_pad=5120 (640 cols); tile_n=2048 (256 cols) -> grid=3, last
    # block covers only 128 of 256 cols.
    x_big = jax.random.normal(kx, (4500, IN_FEATURES), dtype=jnp.float32)
    y_big = linear_pallas(x_big, params["weight"], params["bias"], tile_n=2048)
    jax.block_until_ready(y_big)
    ref_big = x_big @ params["weight"].T + params["bias"]
    assert y_big.shape == (4500, 1)
    assert jnp.allclose(y_big, ref_big, atol=1e-5)

    print("KERNEL_OK")
</pallas_src>

<mosaic_0001>
module attributes {stable_mosaic.version = 11 : i64} {
  func.func @_linear_kernel(%arg0: memref<3xf32, #tpu.memory_space<smem>>, %arg1: memref<1xf32, #tpu.memory_space<smem>>, %arg2: memref<3x8x128xf32, #tpu.memory_space<vmem>>, %arg3: memref<8x128xf32, #tpu.memory_space<vmem>>) attributes {dimension_semantics = [], scalar_prefetch = 0 : i64, scratch_operands = 0 : i64, tpu.core_type = #tpu.core_type<tc>} {
    %c0 = arith.constant 0 : index
    %c0_0 = arith.constant 0 : index
    %c0_1 = arith.constant 0 : index
    %0 = vector.load %arg2[%c0, %c0_0, %c0_1] : memref<3x8x128xf32, #tpu.memory_space<vmem>>, vector<1x8x128xf32>
    %1 = vector.shape_cast %0 : vector<1x8x128xf32> to vector<8x128xf32>
    %c0_2 = arith.constant 0 : index
    %2 = memref.load %arg0[%c0_2] : memref<3xf32, #tpu.memory_space<smem>>
    %3 = vector.broadcast %2 : f32 to vector<8x128xf32>
    %4 = arith.mulf %1, %3 : vector<8x128xf32>
    %c1 = arith.constant 1 : index
    %c0_3 = arith.constant 0 : index
    %c0_4 = arith.constant 0 : index
    %5 = vector.load %arg2[%c1, %c0_3, %c0_4] : memref<3x8x128xf32, #tpu.memory_space<vmem>>, vector<1x8x128xf32>
    %6 = vector.shape_cast %5 : vector<1x8x128xf32> to vector<8x128xf32>
    %c1_5 = arith.constant 1 : index
    %7 = memref.load %arg0[%c1_5] : memref<3xf32, #tpu.memory_space<smem>>
    %8 = vector.broadcast %7 : f32 to vector<8x128xf32>
    %9 = arith.mulf %6, %8 : vector<8x128xf32>
    %10 = arith.addf %4, %9 : vector<8x128xf32>
    %c2 = arith.constant 2 : index
    %c0_6 = arith.constant 0 : index
    %c0_7 = arith.constant 0 : index
    %11 = vector.load %arg2[%c2, %c0_6, %c0_7] : memref<3x8x128xf32, #tpu.memory_space<vmem>>, vector<1x8x128xf32>
    %12 = vector.shape_cast %11 : vector<1x8x128xf32> to vector<8x128xf32>
    %c2_8 = arith.constant 2 : index
    %13 = memref.load %arg0[%c2_8] : memref<3xf32, #tpu.memory_space<smem>>
    %14 = vector.broadcast %13 : f32 to vector<8x128xf32>
    %15 = arith.mulf %12, %14 : vector<8x128xf32>
    %16 = arith.addf %10, %15 : vector<8x128xf32>
    %c0_9 = arith.constant 0 : index
    %17 = memref.load %arg1[%c0_9] : memref<1xf32, #tpu.memory_space<smem>>
    %18 = vector.broadcast %17 : f32 to vector<8x128xf32>
    %19 = arith.addf %16, %18 : vector<8x128xf32>
    %c0_10 = arith.constant 0 : index
    %c0_11 = arith.constant 0 : index
    %20 = vector.load %arg3[%c0_10, %c0_11] : memref<8x128xf32, #tpu.memory_space<vmem>>, vector<8x128xf32>
    tpu.vector_store %arg3[%c0_10, %c0_11], %19 {strides = array<i32>} : memref<8x128xf32, #tpu.memory_space<vmem>>, vector<8x128xf32>,
    return
  }
}

</mosaic_0001>

<bundles_post_ra>
// kernel: dummy_model_forward.1
= control target key start
LH: loop header
LB: loop body
LE: loop exit
PB: predicated region body
PF: predicated region fallthrough
CT: control target
= control target key end

     0   :  { %9 = vsyncpa [#allocation4], 0  ;;  %s111_s0 = inlined_call_operand.vmem [shape: f32[3], index: 0, kind: input, shape index: {}]   ;;  %s112_s1 = inlined_call_operand.<no memory space> [shape: f32[1], index: 1, kind: input, shape index: {}]   ;;  %s113_s2 = inlined_call_operand.vmem [shape: f32[3,8,128], index: 2, kind: input, shape index: {}]   ;;  %s114_s3 = inlined_call_operand.vmem [shape: f32[8,128], index: 3, kind: output, shape index: {}]  }
   0x1   :  { %s16_s14 = sshll.u32 %s111_s0, 4  ;;  %s17_s14 = int_to_ptr.vmem [resolvable:$true] %s16_s14 }
   0x2   :  { %s58_s15 = scalar_lea.vmem %s17_s14, 16  ;;  %p63_p1 = scmp.lt.s32.totalorder %s17_s14, %s17_s14 }
   0x3   :  { %p59_p0 = scmp.ne.s32.totalorder %s17_s14, %s58_s15  ;;  %p64_p2 = scmp.lt.s32.totalorder %s58_s15, %s58_s15 }
   0x5   :  { %p65_p3 = por %p64_p2, %p63_p1 }
   0x7   :  { %p66_p4 = pnand %p65_p3, %p59_p0 }
   0x9   :  { %69 = shalt.err (!%p66_p4)
}
   0xa   :  { %s72_s16 = smov [#allocation3]  }
   0xb   :  { %19 = dma.vmem_to_smem %s17_s14, 16, %s72_s16, [#allocation4]  }
   0xc   :  { %70 = dma.done.wait [#allocation4], 16  }
   0xd   :  { %71 = vsyncadd [#allocation4], 4294967280 }
   0xe   :  { %27 = sfence }
   0xf   :  { %s29_s17 = sld [smem:[#allocation3]]  ;;  %s54_s18 = sld [smem:[#allocation3 + $0x1]]  ;;  %v28_v0 = vld [vmem:[%s113_s2] sm:$0xff]  ;;  %v53_v1 = vld [vmem:[%s113_s2 + $0x8] sm:$0xff]  ;;  %v55_v2 = vld [vmem:[%s113_s2 + $0x10] sm:$0xff]  ;;  %v45_v10 = vstv %s112_s1 }
  0x10   :  { %s56_s19 = sld [smem:[#allocation3 + $0x2]] }
  0x15   :  { %v30_v3 = vstv %s29_s17  ;;  %v35_v4 = vstv %s54_s18 }
  0x16   :  { %v31_v5 = vmul.f32 %v30_v3, %v28_v0  ;;  %v36_v6 = vmul.f32 %v53_v1, %v35_v4  ;;  %v41_v7 = vstv %s56_s19 }
  0x17   :  { %v42_v8 = vmul.f32 %v55_v2, %v41_v7 }
  0x18   :  { %v37_v9 = vadd.f32 %v36_v6, %v31_v5 }
  0x1a   :  { %v43_v11 = vadd.f32 %v42_v8, %v37_v9 }
  0x1c   :  { %v46_v12 = vadd.f32 %v45_v10, %v43_v11 }
  0x1e   :  { %47 = vst [vmem:[%s114_s3] sm:$0xff] %v46_v12 }
  0x1f   :  { %52 = vsyncpa [#allocation4], 1 }

</bundles_post_ra>
